<compile_context>
chip_gen: v5e
topology: v5e:2x2
jax: 0.10.0
libtpu: 0.0.40
codegen_flags: <defaults>
</compile_context>

<pallas_src>
import functools

import jax
import jax.numpy as jnp
from jax.experimental import pallas as pl
from jax.experimental.pallas import tpu as pltpu


def _round_up(n, m):
    return ((n + m - 1) // m) * m


# -----------------------------------------------------------------------------
# Kernel
# -----------------------------------------------------------------------------
def actor_critic_kernel(x_ref, w1_ref, b1_ref, w2_ref, b2_ref, wh_ref, bh_ref,
                        out_ref):
    # x arrives as f32; cast to bf16 in-kernel (saves a wrapper-side HBM pass).
    x = x_ref[...].astype(w1_ref.dtype)

    # l1: f32 MXU accumulate + f32 bias add, then ReLU in bf16.
    h1 = jnp.dot(x, w1_ref[...], preferred_element_type=jnp.float32) + b1_ref[...]
    h1 = jnp.maximum(h1.astype(w2_ref.dtype), 0)

    # l2: same pattern.
    h2 = jnp.dot(h1, w2_ref[...], preferred_element_type=jnp.float32) + b2_ref[...]
    h2 = jnp.maximum(h2.astype(wh_ref.dtype), 0)

    # Fused heads: [action_mean | value | zero-pad] in one lane-dense bf16 slab.
    y = jnp.dot(h2, wh_ref[...], preferred_element_type=jnp.float32) + bh_ref[...]
    out_ref[...] = y.astype(out_ref.dtype)


# -----------------------------------------------------------------------------
# Parameter packing
# -----------------------------------------------------------------------------
def pack_params(params):
    """One-time packing: bf16 weights, fused & lane-padded (mean|value) head."""
    n_actions = params["wm"].shape[1]
    head = n_actions + 1                         # mean lanes + 1 value lane
    head_lanes = _round_up(head, 128)            # lane-dense, works for A >= 128

    w1 = params["w1"].astype(jnp.bfloat16)
    w2 = params["w2"].astype(jnp.bfloat16)
    b1 = params["b1"].astype(jnp.float32)
    b2 = params["b2"].astype(jnp.float32)

    wh = jnp.concatenate([params["wm"], params["wv"]], axis=1)      # (256, A+1)
    bh = jnp.concatenate([params["bm"], params["bv"]], axis=1)      # (1,   A+1)
    pad = head_lanes - head
    wh = jnp.pad(wh, ((0, 0), (0, pad))).astype(jnp.bfloat16)       # (256, HL)
    bh = jnp.pad(bh, ((0, 0), (0, pad))).astype(jnp.float32)        # (1,   HL)

    return dict(w1=w1, b1=b1, w2=w2, b2=b2, wh=wh, bh=bh,
                log_std=params["log_std"].astype(jnp.float32))


# -----------------------------------------------------------------------------
# Tiling policy
# -----------------------------------------------------------------------------
def _device_tiling():
    """Generation-specific (block_b, vmem_limit_bytes)."""
    block_b, vmem_limit = 4096, 48 << 20          # safe under v7x's 64 MiB VMEM
    try:
        info = pltpu.get_tpu_info()
        vmem = getattr(info, "vmem_capacity_bytes", 64 << 20)
        if vmem >= (96 << 20):                    # v5e / v6e: 128 MiB VMEM
            block_b, vmem_limit = 8192, 96 << 20
    except Exception:
        pass
    return block_b, vmem_limit


def _pick_tile(B, block_b):
    if B <= 16:
        return B                                  # single step, full-batch block
    # >= 2 grid steps so v7x megacore can shard the parallel batch axis;
    # sublane-align to 16 for the bf16 output tile.
    return min(block_b, _round_up((B + 1) // 2, 16))


# -----------------------------------------------------------------------------
# Forward
# -----------------------------------------------------------------------------
@functools.partial(jax.jit, static_argnames=("block_b", "vmem_limit_bytes"))
def _forward_impl(x, packed, *, block_b, vmem_limit_bytes):
    B, K = x.shape
    d1 = packed["w1"].shape[1]
    d2 = packed["w2"].shape[1]
    hl = packed["wh"].shape[1]                    # padded head width
    A = packed["log_std"].shape[1]                # true action count (static)

    tb = _pick_tile(B, block_b)
    grid = (pl.cdiv(B, tb),)

    fused = pl.pallas_call(
        actor_critic_kernel,
        out_shape=jax.ShapeDtypeStruct((B, hl), jnp.bfloat16),
        grid=grid,
        in_specs=[
            pl.BlockSpec((tb, K), lambda i: (i, 0)),      # x tile (f32)
            pl.BlockSpec((K, d1), lambda i: (0, 0)),      # w1 (resident)
            pl.BlockSpec((1, d1), lambda i: (0, 0)),      # b1
            pl.BlockSpec((d1, d2), lambda i: (0, 0)),     # w2
            pl.BlockSpec((1, d2), lambda i: (0, 0)),      # b2
            pl.BlockSpec((d2, hl), lambda i: (0, 0)),     # fused head W
            pl.BlockSpec((1, hl), lambda i: (0, 0)),      # fused head b
        ],
        out_specs=pl.BlockSpec((tb, hl), lambda i: (i, 0)),
        compiler_params=pltpu.CompilerParams(
            dimension_semantics=("parallel",),            # 2 TCs on v7x
            vmem_limit_bytes=vmem_limit_bytes,
        ),
    )(x, packed["w1"], packed["b1"], packed["w2"], packed["b2"],
      packed["wh"], packed["bh"])

    action_mean = fused[:, :A].astype(jnp.float32)
    state_values = fused[:, A:A + 1].astype(jnp.float32)
    # std does not depend on x — plain jnp broadcast outside the kernel.
    action_std = jnp.broadcast_to(jnp.exp(packed["log_std"]), (B, A))
    return action_mean, action_std, state_values


def actor_critic_forward(x, packed, *, block_b=None, vmem_limit_bytes=None):
    """x: (B, n_states) f32. packed: output of pack_params.

    Returns (action_mean (B, A), action_std (B, A), state_values (B, 1)).
    """
    if block_b is None or vmem_limit_bytes is None:
        dev_block, dev_vmem = _device_tiling()
        block_b = block_b if block_b is not None else dev_block
        vmem_limit_bytes = (vmem_limit_bytes if vmem_limit_bytes is not None
                            else dev_vmem)
    return _forward_impl(x, packed, block_b=block_b,
                         vmem_limit_bytes=vmem_limit_bytes)


# -----------------------------------------------------------------------------
# Init (mimics PyTorch nn.Linear default U[-1/sqrt(fan_in), 1/sqrt(fan_in)])
# -----------------------------------------------------------------------------
def init_params(key, n_states, n_actions, hidden_size=512):
    def linear(k, fan_in, fan_out):
        kw, kb = jax.random.split(k)
        bound = 1.0 / jnp.sqrt(float(fan_in))
        w = jax.random.uniform(kw, (fan_in, fan_out), jnp.float32, -bound, bound)
        b = jax.random.uniform(kb, (1, fan_out), jnp.float32, -bound, bound)
        return w, b

    k1, k2, k3, k4 = jax.random.split(key, 4)
    w1, b1 = linear(k1, n_states, hidden_size)
    w2, b2 = linear(k2, hidden_size, 256)    # l2 output hard-coded to 256
    wm, bm = linear(k3, 256, n_actions)
    wv, bv = linear(k4, 256, 1)
    log_std = jnp.zeros((1, n_actions), jnp.float32)
    return dict(w1=w1, b1=b1, w2=w2, b2=b2, wm=wm, bm=bm, wv=wv, bv=bv,
                log_std=log_std)


if __name__ == "__main__":
    # Small shapes consistent with the module's forward.
    batch = 8
    n_states = 16
    n_actions = 8
    hidden_size = 64  # constructor arg (l2 output is hard-coded to 256)

    key = jax.random.PRNGKey(0)
    k_x, k_p = jax.random.split(key)
    x = jax.random.normal(k_x, (batch, n_states), jnp.float32)
    params = init_params(k_p, n_states, n_actions, hidden_size)
    packed = pack_params(params)

    action_mean, action_std, state_values = actor_critic_forward(x, packed)
    jax.block_until_ready((action_mean, action_std, state_values))

    # Pure-JAX reference mirroring the kernel's casting (bf16 weights/acts,
    # f32 MXU accumulation, bf16 ReLU, bf16 head output).
    w1b = params["w1"].astype(jnp.bfloat16)
    w2b = params["w2"].astype(jnp.bfloat16)
    wmb = params["wm"].astype(jnp.bfloat16)
    wvb = params["wv"].astype(jnp.bfloat16)
    xb = x.astype(jnp.bfloat16)
    r1 = jnp.dot(xb, w1b, preferred_element_type=jnp.float32) + params["b1"]
    r1 = jnp.maximum(r1.astype(jnp.bfloat16), 0)
    r2 = jnp.dot(r1, w2b, preferred_element_type=jnp.float32) + params["b2"]
    r2 = jnp.maximum(r2.astype(jnp.bfloat16), 0)
    ref_mean = (jnp.dot(r2, wmb, preferred_element_type=jnp.float32)
                + params["bm"]).astype(jnp.bfloat16).astype(jnp.float32)
    ref_val = (jnp.dot(r2, wvb, preferred_element_type=jnp.float32)
               + params["bv"]).astype(jnp.bfloat16).astype(jnp.float32)
    ref_std = jnp.broadcast_to(jnp.exp(params["log_std"]), ref_mean.shape)

    assert action_mean.shape == (batch, n_actions)
    assert action_std.shape == (batch, n_actions)
    assert state_values.shape == (batch, 1)
    assert jnp.allclose(action_mean, ref_mean, atol=2e-2, rtol=2e-2)
    assert jnp.allclose(action_std, ref_std, atol=1e-6, rtol=1e-6)
    assert jnp.allclose(state_values, ref_val, atol=2e-2, rtol=2e-2)

    print("KERNEL_OK")
</pallas_src>

<mosaic_0001>
module attributes {stable_mosaic.version = 11 : i64} {
  func.func @actor_critic_kernel(%arg0: i32, %arg1: memref<8x16xf32, #tpu.memory_space<vmem>>, %arg2: memref<16x64xbf16, #tpu.memory_space<vmem>>, %arg3: memref<1x64xf32, #tpu.memory_space<vmem>>, %arg4: memref<64x256xbf16, #tpu.memory_space<vmem>>, %arg5: memref<1x256xf32, #tpu.memory_space<vmem>>, %arg6: memref<256x128xbf16, #tpu.memory_space<vmem>>, %arg7: memref<1x128xf32, #tpu.memory_space<vmem>>, %arg8: memref<8x128xbf16, #tpu.memory_space<vmem>>) attributes {dimension_semantics = [#tpu.dimension_semantics<parallel>], iteration_bounds = array<i64: 1>, scalar_prefetch = 0 : i64, scratch_operands = 0 : i64, tpu.core_type = #tpu.core_type<tc>, window_params = [{transform_indices = @transform_0, window_bounds = array<i64: 8, 16>}, {pipeline_mode = #tpu.pipeline_mode<synchronous>, transform_indices = @transform_1, window_bounds = array<i64: 16, 64>}, {pipeline_mode = #tpu.pipeline_mode<synchronous>, transform_indices = @transform_2, window_bounds = array<i64: 1, 64>}, {pipeline_mode = #tpu.pipeline_mode<synchronous>, transform_indices = @transform_3, window_bounds = array<i64: 64, 256>}, {pipeline_mode = #tpu.pipeline_mode<synchronous>, transform_indices = @transform_4, window_bounds = array<i64: 1, 256>}, {pipeline_mode = #tpu.pipeline_mode<synchronous>, transform_indices = @transform_5, window_bounds = array<i64: 256, 128>}, {pipeline_mode = #tpu.pipeline_mode<synchronous>, transform_indices = @transform_6, window_bounds = array<i64: 1, 128>}, {transform_indices = @transform_7, window_bounds = array<i64: 8, 128>}]} {
    %c0 = arith.constant 0 : index
    %c0_0 = arith.constant 0 : index
    %0 = vector.load %arg1[%c0, %c0_0] : memref<8x16xf32, #tpu.memory_space<vmem>>, vector<8x16xf32>
    %1 = arith.truncf %0 : vector<8x16xf32> to vector<8x16xbf16>
    %c0_1 = arith.constant 0 : index
    %c0_2 = arith.constant 0 : index
    %2 = vector.load %arg2[%c0_1, %c0_2] : memref<16x64xbf16, #tpu.memory_space<vmem>>, vector<16x64xbf16>
    %cst = arith.constant dense<0.000000e+00> : vector<8x64xf32>
    %3 = tpu.matmul %1, %2, %cst {dimension_numbers = #tpu.dot_dimension_numbers<[1], [0], [0], [1], [0, 0, 1, 1], [], []>} : vector<8x16xbf16>, vector<16x64xbf16>, vector<8x64xf32> -> vector<8x64xf32>
    %c0_3 = arith.constant 0 : index
    %c0_4 = arith.constant 0 : index
    %4 = vector.load %arg3[%c0_3, %c0_4] : memref<1x64xf32, #tpu.memory_space<vmem>>, vector<1x64xf32>
    %5 = vector.broadcast %4 : vector<1x64xf32> to vector<8x64xf32>
    %6 = arith.addf %3, %5 : vector<8x64xf32>
    %7 = arith.truncf %6 : vector<8x64xf32> to vector<8x64xbf16>
    %cst_5 = arith.constant 0.000000e+00 : bf16
    %8 = vector.broadcast %cst_5 : bf16 to vector<8x64xbf16>
    %9 = arith.maximumf %7, %8 : vector<8x64xbf16>
    %c0_6 = arith.constant 0 : index
    %c0_7 = arith.constant 0 : index
    %10 = vector.load %arg4[%c0_6, %c0_7] : memref<64x256xbf16, #tpu.memory_space<vmem>>, vector<64x256xbf16>
    %cst_8 = arith.constant dense<0.000000e+00> : vector<8x256xf32>
    %11 = tpu.matmul %9, %10, %cst_8 {dimension_numbers = #tpu.dot_dimension_numbers<[1], [0], [0], [1], [0, 0, 1, 1], [], []>} : vector<8x64xbf16>, vector<64x256xbf16>, vector<8x256xf32> -> vector<8x256xf32>
    %c0_9 = arith.constant 0 : index
    %c0_10 = arith.constant 0 : index
    %12 = vector.load %arg5[%c0_9, %c0_10] : memref<1x256xf32, #tpu.memory_space<vmem>>, vector<1x256xf32>
    %13 = vector.broadcast %12 : vector<1x256xf32> to vector<8x256xf32>
    %14 = arith.addf %11, %13 : vector<8x256xf32>
    %15 = arith.truncf %14 : vector<8x256xf32> to vector<8x256xbf16>
    %cst_11 = arith.constant 0.000000e+00 : bf16
    %16 = vector.broadcast %cst_11 : bf16 to vector<8x256xbf16>
    %17 = arith.maximumf %15, %16 : vector<8x256xbf16>
    %c0_12 = arith.constant 0 : index
    %c0_13 = arith.constant 0 : index
    %18 = vector.load %arg6[%c0_12, %c0_13] : memref<256x128xbf16, #tpu.memory_space<vmem>>, vector<256x128xbf16>
    %cst_14 = arith.constant dense<0.000000e+00> : vector<8x128xf32>
    %19 = tpu.matmul %17, %18, %cst_14 {dimension_numbers = #tpu.dot_dimension_numbers<[1], [0], [0], [1], [0, 0, 1, 1], [], []>} : vector<8x256xbf16>, vector<256x128xbf16>, vector<8x128xf32> -> vector<8x128xf32>
    %c0_15 = arith.constant 0 : index
    %c0_16 = arith.constant 0 : index
    %20 = vector.load %arg7[%c0_15, %c0_16] : memref<1x128xf32, #tpu.memory_space<vmem>>, vector<1x128xf32>
    %21 = vector.broadcast %20 : vector<1x128xf32> to vector<8x128xf32>
    %22 = arith.addf %19, %21 : vector<8x128xf32>
    %23 = arith.truncf %22 : vector<8x128xf32> to vector<8x128xbf16>
    %c0_17 = arith.constant 0 : index
    %c0_18 = arith.constant 0 : index
    %24 = vector.load %arg8[%c0_17, %c0_18] : memref<8x128xbf16, #tpu.memory_space<vmem>>, vector<8x128xbf16>
    tpu.vector_store %arg8[%c0_17, %c0_18], %23 {strides = array<i32>} : memref<8x128xbf16, #tpu.memory_space<vmem>>, vector<8x128xbf16>,
    return
  }
  func.func @transform_0(%arg0: i32) -> (i32, i32) {
    %c0_i32 = arith.constant 0 : i32
    %c0_i32_0 = arith.constant 0 : i32
    return %arg0, %c0_i32 : i32, i32
  }
  func.func @transform_1(%arg0: i32) -> (i32, i32) {
    %c0_i32 = arith.constant 0 : i32
    %c0_i32_0 = arith.constant 0 : i32
    %c0_i32_1 = arith.constant 0 : i32
    return %c0_i32, %c0_i32_0 : i32, i32
  }
  func.func @transform_2(%arg0: i32) -> (i32, i32) {
    %c0_i32 = arith.constant 0 : i32
    %c0_i32_0 = arith.constant 0 : i32
    %c0_i32_1 = arith.constant 0 : i32
    return %c0_i32, %c0_i32_0 : i32, i32
  }
  func.func @transform_3(%arg0: i32) -> (i32, i32) {
    %c0_i32 = arith.constant 0 : i32
    %c0_i32_0 = arith.constant 0 : i32
    %c0_i32_1 = arith.constant 0 : i32
    return %c0_i32, %c0_i32_0 : i32, i32
  }
  func.func @transform_4(%arg0: i32) -> (i32, i32) {
    %c0_i32 = arith.constant 0 : i32
    %c0_i32_0 = arith.constant 0 : i32
    %c0_i32_1 = arith.constant 0 : i32
    return %c0_i32, %c0_i32_0 : i32, i32
  }
  func.func @transform_5(%arg0: i32) -> (i32, i32) {
    %c0_i32 = arith.constant 0 : i32
    %c0_i32_0 = arith.constant 0 : i32
    %c0_i32_1 = arith.constant 0 : i32
    return %c0_i32, %c0_i32_0 : i32, i32
  }
  func.func @transform_6(%arg0: i32) -> (i32, i32) {
    %c0_i32 = arith.constant 0 : i32
    %c0_i32_0 = arith.constant 0 : i32
    %c0_i32_1 = arith.constant 0 : i32
    return %c0_i32, %c0_i32_0 : i32, i32
  }
  func.func @transform_7(%arg0: i32) -> (i32, i32) {
    %c0_i32 = arith.constant 0 : i32
    %c0_i32_0 = arith.constant 0 : i32
    return %arg0, %c0_i32 : i32, i32
  }
}

</mosaic_0001>

<bundles_post_ra>
// kernel: _forward_impl.1
= control target key start
LH: loop header
LB: loop body
LE: loop exit
PB: predicated region body
PF: predicated region fallthrough
CT: control target
= control target key end

     0   :  { %12 = vsyncpa [#allocation3], 0  ;;  %s694_s0 = inlined_call_operand.hbm [shape: f32[8,16], index: 0, kind: input, shape index: {}]   ;;  %s695_s1 = inlined_call_operand.hbm [shape: bf16[16,64], index: 1, kind: input, shape index: {}]   ;;  %s696_s2 = inlined_call_operand.vmem [shape: f32[1,64], index: 2, kind: input, shape index: {}]   ;;  %s697_s3 = inlined_call_operand.hbm [shape: bf16[64,256], index: 3, kind: input, shape index: {}]   ;;  %s698_s4 = inlined_call_operand.vmem [shape: f32[1,256], index: 4, kind: input, shape index: {}]   ;;  %s699_s5 = inlined_call_operand.hbm [shape: bf16[256,128], index: 5, kind: input, shape index: {}]   ;;  %s700_s6 = inlined_call_operand.vmem [shape: f32[1,128], index: 6, kind: input, shape index: {}]   ;;  %s701_s7 = inlined_call_operand.vmem [shape: bf16[8,128], index: 7, kind: output, shape index: {}]  }
   0x1   :  { %13 = vsyncpa [#allocation5], 0  ;;  %s30_s26 = sshll.u32 %s695_s1, 4  ;;  %s31_s26 = int_to_ptr.hbm [resolvable:$true] %s30_s26 }
   0x2   :  { %14 = vsyncpa [#allocation8], 0  ;;  %s621_s27 = smov [#allocation4]   ;;  %s20_s8 = sshll.u32 %s694_s0, 4  ;;  %s21_s8 = int_to_ptr.hbm [resolvable:$true] %s20_s8 }
   0x3   :  { %s32_s28 = sshll.u32 %s621_s27, 4  ;;  %s622_s9 = smov 64   ;;  %s33_s28 = int_to_ptr.vmem [resolvable:$true] %s32_s28 }
   0x4   :  { %s623_s10 = smov 4   ;;  %s624_s11 = smov [#allocation2]  }
   0x5   :  { %38 = dma.hbm_to_vmem [thread:$0]  %s31_s26, 128, %s33_s28, [#allocation5], %s622_s9, %s622_s9, %s623_s10  }
   0x6   :  { %s22_s12 = sshll.u32 %s624_s11, 4  ;;  %s45_s15 = sshll.u32 %s697_s3, 4  ;;  %s23_s12 = int_to_ptr.vmem [resolvable:$true] %s22_s12  ;;  %s46_s15 = int_to_ptr.hbm [resolvable:$true] %s45_s15 }
   0x7   :  { %25 = dma.hbm_to_vmem [thread:$0]  %s21_s8, 128, %s23_s12, [#allocation3]  }
   0x8   :  { %s625_s1 = smov [#allocation6]   ;;  %s60_s0 = sshll.u32 %s699_s5, 4  ;;  %s61_s0 = int_to_ptr.hbm [resolvable:$true] %s60_s0 }
   0x9   :  { %s47_s16 = sshll.u32 %s625_s1, 4  ;;  %s626_s19 = smov 128   ;;  %s48_s16 = int_to_ptr.vmem [resolvable:$true] %s47_s16 }
   0xa   :  { %s627_s20 = smov 8   ;;  %s628_s21 = smov [#allocation7]  }
   0xb   :  { %53 = dma.hbm_to_vmem [thread:$0]  %s46_s15, 1024, %s48_s16, [#allocation5], %s626_s19, %s626_s19, %s627_s20  }
   0xc   :  { %s62_s22 = sshll.u32 %s628_s21, 4  ;;  %s63_s22 = int_to_ptr.vmem [resolvable:$true] %s62_s22 }
   0xd   :  { %68 = dma.hbm_to_vmem [thread:$0]  %s61_s0, 2048, %s63_s22, [#allocation8], %s622_s9, %s622_s9, %s623_s10  }
   0xe   :  { %615 = dma.done.wait [#allocation3], 128  }
   0xf   :  { %616 = vsyncadd [#allocation3], 4294967168 }
  0x10   :  { %617 = dma.done.wait [#allocation5], 1152  }
  0x11   :  { %618 = vsyncadd [#allocation5], 4294966144 }
  0x12   :  { %619 = dma.done.wait [#allocation8], 2048  }
  0x13   :  { %620 = vsyncadd [#allocation8], 4294965248  ;;  %v484_v0 = vld [vmem:[#allocation4] sm:$0xff]  ;;  %v88_v1 = vld [vmem:[#allocation2] sm:$0xff]  ;;  %vm102_vm0 = vcmask 130048   ;;  %vm177_vm1 = vcmask 523264  }
  0x14   :  { %v412_v2 = vld [vmem:[#allocation6 + $0x30] sm:$0xf]  ;;  %v89_v3 = vpack.c.bf16 %v88_v1, %v88_v1  ;;  %v492_v4 = vld [vmem:[#allocation6 + $0x34] sm:$0xf0]  ;;  %v491_v5 = vld [vmem:[#allocation6 + $0x34] sm:$0xf]  ;;  %113 = vmatpush.bf16.msra.mxu1 %v484_v0 }
  0x15   :  { %v414_v6 = vld [vmem:[#allocation6 + $0x38] sm:$0xf0]  ;;  %v413_v7 = vor.u32 %v492_v4, %v412_v2  ;;  %v404_v9 = vld [vmem:[#allocation6 + $0x20] sm:$0xf]  ;;  %v490_v10 = vld [vmem:[#allocation6 + $0x24] sm:$0xf0] }
  0x16   :  { %v417_v8 = vor.u32 %v491_v5, %v414_v6  ;;  %v489_v11 = vld [vmem:[#allocation6 + $0x24] sm:$0xf]  ;;  %v406_v12 = vld [vmem:[#allocation6 + $0x28] sm:$0xf0]  ;;  %v405_v13 = vor.u32 %v490_v10, %v404_v9  ;;  %v396_v15 = vld [vmem:[#allocation6 + $0x10] sm:$0xf] }
  0x17   :  { %v409_v14 = vor.u32 %v489_v11, %v406_v12  ;;  %385 = vmatmul.msk.bf16.vlgmr.msra.gmra.mxu1 %vm102_vm0, %v89_v3  ;;  %v488_v16 = vld [vmem:[#allocation6 + $0x14] sm:$0xf0]  ;;  %v487_v18 = vld [vmem:[#allocation6 + $0x14] sm:$0xf]  ;;  %v398_v19 = vld [vmem:[#allocation6 + $0x18] sm:$0xf0] }
  0x18   :  { %185 = vmatpush.bf16.msrb.mxu1 %v413_v7  ;;  %198 = vmatpush.bf16.msra.mxu2 %v417_v8  ;;  %v397_v17 = vor.u32 %v488_v16, %v396_v15  ;;  %v401_v20 = vor.u32 %v487_v18, %v398_v19  ;;  %v388_v21 = vld [vmem:[#allocation6] sm:$0xf]  ;;  %v486_v22 = vld [vmem:[#allocation6 + $0x4] sm:$0xf0]  ;;  %v485_v23 = vld [vmem:[#allocation6 + $0x4] sm:$0xf] }
  0x19   :  { %v389_v24 = vor.u32 %v486_v22, %v388_v21  ;;  %v390_v25 = vld [vmem:[#allocation6 + $0x8] sm:$0xf0]  ;;  %v500_v27 = vld [vmem:[#allocation7 + $0x38] sm:$0xff]  ;;  %v499_v29 = vld [vmem:[#allocation7 + $0x30] sm:$0xff] }
  0x1a   :  { %v393_v26 = vor.u32 %v485_v23, %v390_v25  ;;  %v508_v28 = vld [vmem:[#allocation7 + $0x78] sm:$0xff]  ;;  %346 = vmatpush.bf16.msra.mxu3 %v500_v27  ;;  %v507_v30 = vld [vmem:[#allocation7 + $0x70] sm:$0xff]  ;;  %v498_v31 = vld [vmem:[#allocation7 + $0x28] sm:$0xff] }
  0x1b   :  { %359 = vmatpush.bf16.msra.mxu0 %v508_v28  ;;  %v506_v32 = vld [vmem:[#allocation7 + $0x68] sm:$0xff]  ;;  %v497_v33 = vld [vmem:[#allocation7 + $0x20] sm:$0xff]  ;;  %v496_v35 = vld [vmem:[#allocation7 + $0x18] sm:$0xff] }
  0x1c   :  { %186 = vmatpush.bf16.msrb.mxu1 %v405_v13  ;;  %199 = vmatpush.bf16.msra.mxu2 %v409_v14  ;;  %v505_v34 = vld [vmem:[#allocation7 + $0x60] sm:$0xff]  ;;  %v504_v36 = vld [vmem:[#allocation7 + $0x58] sm:$0xff]  ;;  %v495_v37 = vld [vmem:[#allocation7 + $0x10] sm:$0xff] }
  0x1d   :  { %v517_v38 = vld [vmem:[%s696_s2] ss:$0 sm:$0xff]  ;;  %v494_v44 = vld [vmem:[#allocation7 + $0x8] sm:$0xff]  ;;  %v493_v46 = vld [vmem:[#allocation7] sm:$0xff] }
  0x1e   :  { %347 = vmatpush.bf16.msra.mxu3 %v499_v29  ;;  %v503_v45 = vld [vmem:[#allocation7 + $0x50] sm:$0xff]  ;;  %v502_v47 = vld [vmem:[#allocation7 + $0x48] sm:$0xff]  ;;  %v501_v48 = vld [vmem:[#allocation7 + $0x40] sm:$0xff] }
  0x1f   :  { %360 = vmatpush.bf16.msra.mxu0 %v507_v30  ;;  %v131_v49 = vld [vmem:[%s698_s4] sm:$0x3] }
  0x20   :  { %187 = vmatpush.bf16.msrb.mxu1 %v397_v17  ;;  %200 = vmatpush.bf16.msra.mxu2 %v401_v20  ;;  %v133_v50 = vperm.slane %v131_v49, 0  ;;  %v134_v54 = vperm.slane %v131_v49, 1  ;;  %v518_v62 = vld [vmem:[%s700_s6] ss:$0 sm:$0xff] }
  0x22   :  { %348 = vmatpush.bf16.msra.mxu3 %v498_v31 }
  0x23   :  { %361 = vmatpush.bf16.msra.mxu0 %v506_v32 }
  0x24   :  { %188 = vmatpush.bf16.msrb.mxu1 %v389_v24  ;;  %201 = vmatpush.bf16.msra.mxu2 %v393_v26 }
  0x26   :  { %349 = vmatpush.bf16.msra.mxu3 %v497_v33 }
  0x27   :  { %362 = vmatpush.bf16.msra.mxu0 %v505_v34 }
  0x2a   :  { %350 = vmatpush.bf16.msra.mxu3 %v496_v35 }
  0x2b   :  { %363 = vmatpush.bf16.msra.mxu0 %v504_v36 }
  0x2e   :  { %351 = vmatpush.bf16.msra.mxu3 %v495_v37 }
  0x2f   :  { %364 = vmatpush.bf16.msra.mxu0 %v503_v45 }
  0x32   :  { %352 = vmatpush.bf16.msra.mxu3 %v494_v44 }
  0x33   :  { %365 = vmatpush.bf16.msra.mxu0 %v502_v47 }
  0x36   :  { %353 = vmatpush.bf16.msra.mxu3 %v493_v46 }
  0x37   :  { %366 = vmatpush.bf16.msra.mxu0 %v501_v48 }
  0x94   :  { %v115_v39 = vpop.f32.mrf.mxu1 }
  0x95   :  { %v116_v40 = vadd.f32 %v517_v38, %v115_v39 }
  0x97   :  { %v121_v41 = vmax.f32 %v116_v40, 0.0 }
  0x99   :  { %v122_v42 = vpack.c.bf16 %v121_v41, %v121_v41 }
  0x9b   :  { %418 = vmatmul.msk.bf16.vlgmr.msrb.gmra.mxu1 %vm177_vm1, %v122_v42  ;;  %419 = vmatmul.msk.bf16.vlgmr.msra.gmra.mxu2 %vm177_vm1, %v122_v42 }
  0x9c   :  { %v117_v43 = vpop.f32.mrf.mxu1 }
 0x118   :  { %v190_v51 = vpop.f32.mrf.mxu1 }
 0x119   :  { %v191_v52 = vadd.f32 %v190_v51, %v133_v50 }
 0x11b   :  { %v210_v53 = vmax.f32 %v191_v52, 0.0 }
 0x11d   :  { %v212_v55 = vpack.c.bf16 %v210_v53, %v210_v53 }
 0x11e   :  { %v203_v56 = vpop.f32.mrf.mxu2 }
 0x11f   :  { %v204_v57 = vadd.f32 %v203_v56, %v134_v54  ;;  %354 = vmatmul.bf16.vlgmr.msra.gmra.mxu3 %v212_v55 }
 0x120   :  { %v192_v58 = vpop.f32.mrf.mxu1 }
 0x121   :  { %v211_v59 = vmax.f32 %v204_v57, 0.0 }
 0x123   :  { %v213_v60 = vpack.c.bf16 %v211_v59, %v211_v59 }
 0x125   :  { %367 = vmatmul.bf16.vlgmr.msra.gmra.mxu0 %v213_v60 }
 0x126   :  { %v205_v61 = vpop.f32.mrf.mxu2 }
 0x1a2   :  { %v355_v63 = vpop.f32.mrf.mxu3  ;;  %v368_v0 = vpop.f32.mrf.mxu0 }
 0x1a3   :  { %v356_v1 = vadd.f32 %v518_v62, %v355_v63 }
 0x1a5   :  { %v369_v2 = vadd.f32 %v368_v0, %v356_v1 }
 0x1a7   :  { %v372_v3 = vpack.c.bf16 %v369_v2, %v369_v2 }
 0x1a9   :  { %373 = vst [vmem:[%s701_s7] sm:$0xf] %v372_v3 }
 0x1aa   :  { %v357_v4 = vpop.f32.mrf.mxu3  ;;  %v370_v5 = vpop.f32.mrf.mxu0 }
 0x1ab   :  { %378 = vsyncpa [#allocation3], 1 }
 0x1ac   :  { %379 = vsyncpa [#allocation5], 1 }
 0x1ad   :  { %380 = vsyncpa [#allocation8], 1 }

</bundles_post_ra>
